<compile_context>
chip_gen: v5e
topology: v5e:2x2
jax: 0.10.0
libtpu: 0.0.40
codegen_flags: <defaults>
</compile_context>

<pallas_src>
import functools

import jax
import jax.numpy as jnp
from jax import lax
from jax.experimental import pallas as pl
from jax.experimental.pallas import tpu as pltpu


def _group_conv_kernel(p_ref, w_ref, b_ref, gam_ref, bet_ref, o_ref, *,
                       act_norm: bool, eps: float, neg_slope: float):
    # p_ref:   (1, 1, K, L)   im2col patches for this (batch, group)
    # w_ref:   (1, Cg, K)     group weights
    # b_ref:   (1, Cg, 1)     conv bias
    # gam_ref: (1, Cg, 1)     GroupNorm gamma
    # bet_ref: (1, Cg, 1)     GroupNorm beta
    # o_ref:   (1, 1, Cg, L)  output block (lane axis = L = OH*OW, lane-dense)
    patches = p_ref[...][0, 0]                     # (K, L)
    w = w_ref[...][0]                              # (Cg, K)

    # Grouped conv for this (b, g) as a single MXU matmul.
    y = jnp.dot(w, patches, preferred_element_type=jnp.float32)   # (Cg, L)
    y = y + b_ref[...][0]                          # (Cg, 1) broadcast over lanes

    if act_norm:
        # GroupNorm: the whole normalization group (Cg x OH*OW) is resident,
        # so the reduction is a single in-VMEM scalar reduce (biased variance,
        # matching torch.nn.GroupNorm).
        mean = jnp.mean(y)
        var = jnp.mean(jnp.square(y - mean))
        y = (y - mean) * lax.rsqrt(var + eps)
        y = y * gam_ref[...][0] + bet_ref[...][0]
        # LeakyReLU(0.2)
        y = jnp.where(y >= 0, y, neg_slope * y)

    o_ref[...] = y[None, None].astype(o_ref.dtype)


def group_conv2d_forward(x, weight, bias, gamma, beta, *, stride, padding,
                         groups, act_norm=False, eps=1e-5, neg_slope=0.2):
    """Forward pass of GroupConv2d (NCHW, PyTorch layout)."""
    B, C_in, H, W = x.shape
    C_out, C_in_g, k, k2 = weight.shape
    assert k == k2
    G = groups
    assert C_in == C_in_g * G and C_out % G == 0
    Cg = C_out // G
    s, p = stride, padding
    OH = (H + 2 * p - k) // s + 1
    OW = (W + 2 * p - k) // s + 1
    L = OH * OW
    K = C_in_g * k * k

    # --- im2col glue (plain-JAX layout plumbing): patches (B, G, K, L) ------
    x_pad = jnp.pad(x.astype(jnp.float32), ((0, 0), (0, 0), (p, p), (p, p)))
    cols = []
    for dh in range(k):
        for dw in range(k):
            cols.append(lax.slice(
                x_pad,
                (0, 0, dh, dw),
                (B, C_in, dh + s * (OH - 1) + 1, dw + s * (OW - 1) + 1),
                (1, 1, s, s)))                       # (B, C_in, OH, OW)
    patches = jnp.stack(cols, axis=2)                # (B, C_in, k*k, OH, OW)
    patches = patches.reshape(B, G, K, L)            # K ordered (ci, kh, kw)

    w_g = weight.astype(jnp.float32).reshape(G, Cg, K)
    b_g = bias.astype(jnp.float32).reshape(G, Cg, 1)
    gam_g = gamma.astype(jnp.float32).reshape(G, Cg, 1)
    bet_g = beta.astype(jnp.float32).reshape(G, Cg, 1)

    kern = functools.partial(_group_conv_kernel, act_norm=act_norm, eps=eps,
                             neg_slope=neg_slope)

    out = pl.pallas_call(
        kern,
        out_shape=jax.ShapeDtypeStruct((B, G, Cg, L), jnp.float32),
        grid_spec=pltpu.PrefetchScalarGridSpec(
            num_scalar_prefetch=0,
            grid=(B, G),
            in_specs=[
                pl.BlockSpec((1, 1, K, L), lambda b, g: (b, g, 0, 0)),
                pl.BlockSpec((1, Cg, K), lambda b, g: (g, 0, 0)),
                pl.BlockSpec((1, Cg, 1), lambda b, g: (g, 0, 0)),
                pl.BlockSpec((1, Cg, 1), lambda b, g: (g, 0, 0)),
                pl.BlockSpec((1, Cg, 1), lambda b, g: (g, 0, 0)),
            ],
            out_specs=pl.BlockSpec((1, 1, Cg, L), lambda b, g: (b, g, 0, 0)),
        ),
        compiler_params=pltpu.CompilerParams(
            dimension_semantics=("parallel", "parallel")),
    )(patches, w_g, b_g, gam_g, bet_g)

    return out.reshape(B, C_out, OH, OW)


def reference_forward(x, weight, bias, gamma, beta, *, stride, padding, groups,
                      act_norm, eps=1e-5, neg_slope=0.2):
    """Plain-JAX reference mirroring the PyTorch module."""
    s, p, G = stride, padding, groups
    C_out = weight.shape[0]
    y = lax.conv_general_dilated(
        x.astype(jnp.float32), weight.astype(jnp.float32),
        window_strides=(s, s), padding=((p, p), (p, p)),
        dimension_numbers=("NCHW", "OIHW", "NCHW"), feature_group_count=G)
    y = y + bias.reshape(1, C_out, 1, 1)
    if act_norm:
        Bz, Cz, Hz, Wz = y.shape
        r = y.reshape(Bz, G, -1)
        mean = r.mean(axis=-1, keepdims=True)
        var = ((r - mean) ** 2).mean(axis=-1, keepdims=True)
        r = (r - mean) / jnp.sqrt(var + eps)
        y = r.reshape(Bz, Cz, Hz, Wz) * gamma.reshape(1, Cz, 1, 1) \
            + beta.reshape(1, Cz, 1, 1)
        y = jnp.where(y >= 0, y, neg_slope * y)
    return y


if __name__ == "__main__":
    # GroupConv2d(in_channels=4, out_channels=8, kernel_size=3, stride=2,
    #             padding=1, groups=2, act_norm=True)
    B, C_in, C_out = 2, 4, 8
    H = W = 16
    kernel_size, stride, padding, groups = 3, 2, 1, 2

    key = jax.random.PRNGKey(0)
    k1, k2, k3, k4, k5 = jax.random.split(key, 5)
    x = jax.random.normal(k1, (B, C_in, H, W), dtype=jnp.float32)
    weight = 0.2 * jax.random.normal(
        k2, (C_out, C_in // groups, kernel_size, kernel_size), jnp.float32)
    bias = 0.1 * jax.random.normal(k3, (C_out,), jnp.float32)
    gamma = 1.0 + 0.1 * jax.random.normal(k4, (C_out,), jnp.float32)
    beta = 0.1 * jax.random.normal(k5, (C_out,), jnp.float32)

    for act_norm in (False, True):
        y = group_conv2d_forward(x, weight, bias, gamma, beta,
                                 stride=stride, padding=padding, groups=groups,
                                 act_norm=act_norm)
        y = jax.block_until_ready(y)
        ref = reference_forward(x, weight, bias, gamma, beta,
                                stride=stride, padding=padding, groups=groups,
                                act_norm=act_norm)
        assert y.shape == ref.shape, (y.shape, ref.shape)
        assert jnp.allclose(y, ref, atol=1e-4, rtol=1e-4), \
            f"Pallas output mismatch vs reference (act_norm={act_norm})"

    print("KERNEL_OK")
</pallas_src>

<mosaic_0001>
module attributes {stable_mosaic.version = 11 : i64} {
  func.func @_group_conv_kernel(%arg0: i32, %arg1: i32, %arg2: memref<1x1x18x64xf32, #tpu.memory_space<vmem>>, %arg3: memref<1x4x18xf32, #tpu.memory_space<vmem>>, %arg4: memref<1x4x1xf32, #tpu.memory_space<vmem>>, %arg5: memref<1x4x1xf32, #tpu.memory_space<vmem>>, %arg6: memref<1x4x1xf32, #tpu.memory_space<vmem>>, %arg7: memref<1x1x4x64xf32, #tpu.memory_space<vmem>>) attributes {dimension_semantics = [#tpu.dimension_semantics<parallel>, #tpu.dimension_semantics<parallel>], iteration_bounds = array<i64: 2, 2>, scalar_prefetch = 0 : i64, scratch_operands = 0 : i64, tpu.core_type = #tpu.core_type<tc>, window_params = [{transform_indices = @transform_0, window_bounds = array<i64: 1, 1, 18, 64>}, {transform_indices = @transform_1, window_bounds = array<i64: 1, 4, 18>}, {transform_indices = @transform_2, window_bounds = array<i64: 1, 4, 1>}, {transform_indices = @transform_3, window_bounds = array<i64: 1, 4, 1>}, {transform_indices = @transform_4, window_bounds = array<i64: 1, 4, 1>}, {transform_indices = @transform_5, window_bounds = array<i64: 1, 1, 4, 64>}]} {
    %c0 = arith.constant 0 : index
    %c0_0 = arith.constant 0 : index
    %c0_1 = arith.constant 0 : index
    %c0_2 = arith.constant 0 : index
    %0 = vector.load %arg2[%c0, %c0_0, %c0_1, %c0_2] : memref<1x1x18x64xf32, #tpu.memory_space<vmem>>, vector<1x1x18x64xf32>
    %1 = vector.shape_cast %0 : vector<1x1x18x64xf32> to vector<18x64xf32>
    %c0_3 = arith.constant 0 : index
    %c0_4 = arith.constant 0 : index
    %c0_5 = arith.constant 0 : index
    %2 = vector.load %arg3[%c0_3, %c0_4, %c0_5] : memref<1x4x18xf32, #tpu.memory_space<vmem>>, vector<1x4x18xf32>
    %3 = vector.shape_cast %2 : vector<1x4x18xf32> to vector<4x18xf32>
    %cst = arith.constant dense<0.000000e+00> : vector<4x64xf32>
    %4 = tpu.matmul %3, %1, %cst {dimension_numbers = #tpu.dot_dimension_numbers<[1], [0], [0], [1], [0, 0, 1, 1], [], []>} : vector<4x18xf32>, vector<18x64xf32>, vector<4x64xf32> -> vector<4x64xf32>
    %c0_6 = arith.constant 0 : index
    %c0_7 = arith.constant 0 : index
    %c0_8 = arith.constant 0 : index
    %5 = vector.load %arg4[%c0_6, %c0_7, %c0_8] : memref<1x4x1xf32, #tpu.memory_space<vmem>>, vector<1x4x1xf32>
    %6 = vector.shape_cast %5 : vector<1x4x1xf32> to vector<4x1xf32>
    %7 = vector.broadcast %6 : vector<4x1xf32> to vector<4x64xf32>
    %8 = arith.addf %4, %7 : vector<4x64xf32>
    %9 = vector.shape_cast %8 : vector<4x64xf32> to vector<1x1x4x64xf32>
    %c0_9 = arith.constant 0 : index
    %c0_10 = arith.constant 0 : index
    %c0_11 = arith.constant 0 : index
    %c0_12 = arith.constant 0 : index
    %10 = vector.load %arg7[%c0_9, %c0_10, %c0_11, %c0_12] : memref<1x1x4x64xf32, #tpu.memory_space<vmem>>, vector<1x1x4x64xf32>
    tpu.vector_store %arg7[%c0_9, %c0_10, %c0_11, %c0_12], %9 {strides = array<i32>} : memref<1x1x4x64xf32, #tpu.memory_space<vmem>>, vector<1x1x4x64xf32>,
    return
  }
  func.func @transform_0(%arg0: i32, %arg1: i32) -> (i32, i32, i32, i32) {
    %c0_i32 = arith.constant 0 : i32
    %c0_i32_0 = arith.constant 0 : i32
    %c0_i32_1 = arith.constant 0 : i32
    return %arg0, %arg1, %c0_i32, %c0_i32_0 : i32, i32, i32, i32
  }
  func.func @transform_1(%arg0: i32, %arg1: i32) -> (i32, i32, i32) {
    %c0_i32 = arith.constant 0 : i32
    %c0_i32_0 = arith.constant 0 : i32
    %c0_i32_1 = arith.constant 0 : i32
    return %arg1, %c0_i32, %c0_i32_0 : i32, i32, i32
  }
  func.func @transform_2(%arg0: i32, %arg1: i32) -> (i32, i32, i32) {
    %c0_i32 = arith.constant 0 : i32
    %c0_i32_0 = arith.constant 0 : i32
    %c0_i32_1 = arith.constant 0 : i32
    return %arg1, %c0_i32, %c0_i32_0 : i32, i32, i32
  }
  func.func @transform_3(%arg0: i32, %arg1: i32) -> (i32, i32, i32) {
    %c0_i32 = arith.constant 0 : i32
    %c0_i32_0 = arith.constant 0 : i32
    %c0_i32_1 = arith.constant 0 : i32
    return %arg1, %c0_i32, %c0_i32_0 : i32, i32, i32
  }
  func.func @transform_4(%arg0: i32, %arg1: i32) -> (i32, i32, i32) {
    %c0_i32 = arith.constant 0 : i32
    %c0_i32_0 = arith.constant 0 : i32
    %c0_i32_1 = arith.constant 0 : i32
    return %arg1, %c0_i32, %c0_i32_0 : i32, i32, i32
  }
  func.func @transform_5(%arg0: i32, %arg1: i32) -> (i32, i32, i32, i32) {
    %c0_i32 = arith.constant 0 : i32
    %c0_i32_0 = arith.constant 0 : i32
    %c0_i32_1 = arith.constant 0 : i32
    return %arg0, %arg1, %c0_i32, %c0_i32_0 : i32, i32, i32, i32
  }
}

</mosaic_0001>

<bundles_post_ra>
// kernel: tpu_custom_call.1
= control target key start
LH: loop header
LB: loop body
LE: loop exit
PB: predicated region body
PF: predicated region fallthrough
CT: control target
= control target key end

     0   :  { %10 = vsyncpa [#allocation3], 0  ;;  %s852_s0 = inlined_call_operand.vmem [shape: f32[2,2,18,64], index: 0, kind: input, shape index: {}]   ;;  %s853_s1 = inlined_call_operand.vmem [shape: f32[2,4,18], index: 1, kind: input, shape index: {}]   ;;  %s854_s2 = inlined_call_operand.vmem [shape: f32[2,4,1], index: 2, kind: input, shape index: {}]   ;;  %s855_s3 = inlined_call_operand.vmem [shape: f32[2,4,1], index: 3, kind: input, shape index: {}]   ;;  %s856_s4 = inlined_call_operand.vmem [shape: f32[2,4,1], index: 4, kind: input, shape index: {}]   ;;  %s857_s5 = inlined_call_operand.hbm [shape: f32[2,2,4,64], index: 5, kind: output, shape index: {}]  }
   0x1   :  { %12 = vsyncpa [#allocation3 + $0x1], 0  ;;  %s724_s18 = smov 0   ;;  %s726_s19 = smov 0  }
   0x2   :  { %s728_s20 = smov 0   ;;  %s730_s21 = smov 0  }
   0x3   :  { %s732_s22 = smov 0   ;;  %s734_s23 = smov 0  }
   0x4   :  { %s736_s3 = smov 0   ;;  %s738_s4 = smov 0  }
   0x5 LB: > { %s506_s24 = sadd.s32 4294967295, %s691_s4   ;;  %s507_s25 = sadd.s32 4294967294, %s691_s4   ;;  %s691_s4 = sphi %s738_s4, %s18_s4   ;;  %s687_s3 = sphi %s736_s3, %s866_s3   ;;  %s683_s23 = sphi %s734_s23, %s865_s23   ;;  %s679_s22 = sphi %s732_s22, %s864_s22   ;;  %s675_s21 = sphi %s730_s21, %s863_s21   ;;  %s671_s20 = sphi %s728_s20, %s862_s20   ;;  %s667_s19 = sphi %s726_s19, %s861_s19   ;;  %s663_s18 = sphi %s724_s18, %s860_s18  }
   0x6   : > { %s27_s26 = sadd.s32 1, %s683_s23  ;;  %s30_s27 = sadd.s32 1, %s687_s3 }
   0x7   : > { %p28_p0 = scmp.ge.s32.totalorder %s27_s26, 2  ;;  %p181_p1 = scmp.ne.s32.totalorder %s671_s20, %s667_s19 }
   0x8   : > { %p182_p2 = scmp.eq.s32.totalorder %s506_s24, 3  ;;  %p187_p5 = scmp.ne.s32.totalorder %s667_s19, %s663_s18 }
   0x9   : > { %s868_s26 = smov (%p28_p0, %s27_s26), 0  ;;  %s870_s27 = smov (!%p28_p0, %s30_s27), %s687_s3 }
   0xa   : > { %s167_s28 = ssub.s32 %s683_s23, %s868_s26  ;;  %p775_p3 = por %p182_p2, %p181_p1 }
   0xb   : > { %p32_p4 = scmp.ge.s32.totalorder %s870_s27, 2  ;;  %p188_p6 = scmp.eq.s32.totalorder %s507_s25, 3 }
   0xc   : > { %p510_p7 = scmp.ge.s32.totalorder %s691_s4, 1  ;;  %p246_p9 = scmp.lt.s32.totalorder %s691_s4, 5 }
   0xd   : > { %s872_s27 = smov (%p32_p4, %s870_s27), 0  ;;  %p784_p8 = por %p188_p6, %p187_p5 }
   0xe   : > { %s166_s6 = ssub.s32 %s687_s3, %s872_s27  ;;  %s171_s7 = sadd.s32 1, %s671_s20 }
   0xf   : > { %s168_s8 = sor.u32 %s167_s28, %s166_s6  ;;  %p247_p10 = pnand %p510_p7, %p246_p9 }
  0x10   : > { %p169_p11 = scmp.eq.s32.totalorder %s168_s8, 0  ;;  %p294_p12 = scmp.lt.s32.totalorder (!%p247_p10), %s679_s22, 1 }
  0x11   : > { %250 = sbr.rel (%p247_p10) target bundleno = 167 (0xa7), region = 40  ;;  %p296_p13 = scmp.lt.s32.totalorder (!%p247_p10), %s675_s21, 1 }
  0x12   : > { %s793_s9 = scalar_select %p169_p11, %s671_s20, %s171_s7  }
  0x16   : > { %v693_v0 = vmov 0   ;;  %s295_s10 = scalar_select %p294_p12, %s679_s22, 1  ;;  %vm333_vm0 = vcmask 1041408   ;;  %vm329_vm1 = vcmask 146432   ;;  %vm357_vm2 = vcmask 519168  }
  0x17   : > { %596 = vset.pattern.permute.xlu0 %v693_v0  ;;  %s297_s11 = scalar_select %p296_p13, %s675_s21, 1 }
  0x18   : > { %s523_s12 = smul.u32 6, %s295_s10 }
  0x19   : > { %s522_s13 = smul.u32 3, %s297_s11  ;;  %s513_s14 = sshll.u32 %s297_s11, 2 }
  0x1a   : > { %s310_s17 = scalar_lea.vmem %s854_s2, %s513_s14  ;;  %s306_s11 = scalar_lea.vmem %s853_s1, %s513_s14 }
  0x1b   : > { %s300_s24 = sadd.s32 %s523_s12, %s522_s13  ;;  %v323_v1 = vld [vmem:[%s310_s17] sm:$0xf]  ;;  %s518_s12 = sshll.u32 %s679_s22, 1 }
  0x1c   : > { %s512_s25 = sshll.u32 %s300_s24, 3  ;;  %326 = vperm.xlu0 %596, %v323_v1   ;;  %v322_v5 = vld [vmem:[%s306_s11] sm:$0xf]  ;;  %s291_s13 = sand.u32 1, %s667_s19  }
  0x1d   : > { %s302_s7 = scalar_lea.vmem %s852_s0, %s512_s25  ;;  %s370_s15 = sadd.s32 %s675_s21, %s518_s12 }
  0x1e   : > { %v321_v2 = vld [vmem:[%s302_s7 + $0x10] sm:$0x3]  ;;  %v320_v3 = vld [vmem:[%s302_s7 + $0x8] sm:$0xff]  ;;  %v319_v4 = vld [vmem:[%s302_s7] sm:$0xff]  ;;  %s511_s16 = sshll.u32 %s291_s13, 2  ;;  %s519_s17 = sshll.u32 %s370_s15, 2 }
  0x1f   : > { %515 = vmatpush.msk.msra.mxu0 %vm333_vm0, %v321_v2  ;;  %s372_s28 = scalar_lea.hbm %s857_s5, %s519_s17  ;;  %s293_s6 = scalar_lea.vmem [#allocation2], %s511_s16 }
  0x20   : > { %s374_s14 = sshll.u32 %s293_s6, 4  ;;  %s376_s8 = sshll.u32 %s372_s28, 4  ;;  %s375_s14 = int_to_ptr.vmem [resolvable:$true] %s374_s14  ;;  %s377_s8 = int_to_ptr.hbm [resolvable:$true] %s376_s8 }
  0x21   : > { %351 = vmatpush.msra.mxu0 %v320_v3  ;;  %s360_s22 = scalar_lea.sflag [#allocation3], %s291_s13  ;;  %s611_s7 = sshra.s32 %s377_s8, 4  ;;  %s612_s7 = int_to_ptr.hbm [resolvable:$true] %s611_s7 }
  0x22   : > { %s613_s21 = scalar_lea.hbm %s612_s7, 4  ;;  %s617_s12 = scalar_lea.hbm %s857_s5, 16 }
  0x23   : > { %352 = vmatpush.msra.mxu0 %v319_v4  ;;  %p614_p0 = scmp.ne.s32.totalorder %s612_s7, %s613_s21  ;;  %p618_p4 = scmp.lt.s32.totalorder %s612_s7, %s857_s5 }
  0x24   : > { %516 = vmatmul.msk.f32.vlgmr.msra.gmra.mxu0 %vm329_vm1, %v322_v5  ;;  %p619_p5 = scmp.lt.s32.totalorder %s617_s12, %s613_s21 }
  0x25   : > { %p615_p1 = pnand %p614_p0, %p775_p3 }
  0x26   : > { %p620_p6 = por %p619_p5, %p618_p4 }
  0x27   : > { %p616_p2 = pneg %p615_p1 }
  0x29   : > { %p621_p7 = pnand %p620_p6, %p616_p2 }
  0x8e   : > { %v327_v6 = vpop.permute.xlu0 %326 }
  0xa1   : > { %v354_v7 = vpop.f32.mrf.mxu0 }
  0xa2   : > { %v355_v8 = vadd.f32 %v354_v7, %v327_v6 }
  0xa4   : > { %358 = vst.msk [vmem:[%s293_s6] sm:$0xf] %vm357_vm2, %v355_v8 }
  0xa5   : > { %624 = shalt.err (!%p621_p7)
}
  0xa6   : > { %524 = dma.vmem_to_hbm [thread:$0]  (%p775_p3), %s375_s14, 64, %s377_s8, %s360_s22  }
  0xa7 PF: > { %p530_p9 = scmp.ge.s32.totalorder %s691_s4, 2  ;;  %s388_s13 = sand.u32 1, %s663_s18  }
  0xa8   : > { %s389_s17 = scalar_lea.sflag [#allocation3], %s388_s13 }
  0xa9   : > { %p527_p10 = pnand %p530_p9, %p784_p8 }
  0xab   : > { %p528_p11 = pneg %p527_p10 }
  0xad   : > { %658 = dma.done.wait (%p528_p11), %s389_s17, 64  }
  0xae   : > { %660 = vsyncadd (%p528_p11), %s389_s17, 4294967232  ;;  %s18_s4 = sadd.s32 1, %s691_s4   ;;  %s860_s18 = smov %s667_s19 }
  0xaf   : > { %p15_p12 = scmp.ge.s32.totalorder %s18_s4, 6   ;;  %s861_s19 = smov %s671_s20 }
  0xb0   : > { %s862_s20 = smov %s793_s9  ;;  %s863_s21 = smov %s683_s23 }
  0xb1   : > { %s864_s22 = smov %s687_s3  ;;  %s865_s23 = smov %s868_s26 }
  0xb2   : > { %s866_s3 = smov %s872_s27  ;;  %17 = sbr.rel (!%p15_p12) target bundleno = 5 (0x5), region = 87 }
  0xb7   :  { %395 = vsyncpa [#allocation3], 1 }
  0xb8   :  { %397 = vsyncpa [#allocation3 + $0x1], 1 }

</bundles_post_ra>
